<compile_context>
chip_gen: v7x
topology: tpu7x:2x2x1
jax: 0.10.0
libtpu: 0.0.40
codegen_flags: <defaults>
</compile_context>

<pallas_src>
import jax
import jax.numpy as jnp
from jax.experimental import pallas as pl
from jax.experimental.pallas import tpu as pltpu

HIDDEN = 32          # hidden_dim (reference default 256; small for the demo)
NUM_CLASSES = 8
CLIP_DIM = 512       # fixed by CLIP ViT-B/32
LANE = 128           # TPU lane width; GNN/classifier channels are zero-padded to this
LN_EPS = 1e-5
BN_EPS = 1e-5


def _layernorm(h, gamma, beta):
    mu = jnp.mean(h, axis=-1, keepdims=True)
    var = jnp.mean((h - mu) ** 2, axis=-1, keepdims=True)
    return (h - mu) * jax.lax.rsqrt(var + LN_EPS) * gamma + beta


def joint_model_kernel(
    feats_ref,    # (2B, 512) bf16  rows 0:B = image features, rows B:2B = text features
    wproj_ref,    # (512, 2H) bf16  cols 0:H = wi, cols H:2H = wt  (fused projection weight)
    wslab_ref,    # (512, 128) bf16 rows 0:2H = wg1, 128:256 = wg2, 256:384 = wg3,
                  #                 384:512 = classifier weight with eval-BN folded in
    vslab_ref,    # (10, 128) f32   rows: [bi, gi, bei, bt, gt, bet, bg1, bg2, bg3, bc_fold]
    batch_ref,    # (1, N) int32    node -> graph assignment
    out_ref,      # (G, 128) f32    lane-dense logits (first NUM_CLASSES columns valid)
):
    f32 = jnp.float32
    bf16 = jnp.bfloat16
    B = feats_ref.shape[0] // 2
    H = wproj_ref.shape[1] // 2

    # Fused image+text projection heads: one K=512 matmul (bf16 MXU, f32 acc).
    # proj[0:B, 0:H] = img @ wi ; proj[B:2B, H:2H] = txt @ wt (the cross blocks are
    # discarded - the extra FLOPs are free at these shapes vs. a second MXU drain).
    # Then Linear bias -> LayerNorm -> ReLU (Dropout = identity in eval); f32 VPU math.
    proj = jnp.dot(feats_ref[...], wproj_ref[...], preferred_element_type=f32)   # (2B, 2H)
    hi = _layernorm(proj[0:B, 0:H] + vslab_ref[0:1, 0:H],
                    vslab_ref[1:2, 0:H], vslab_ref[2:3, 0:H])
    ht = _layernorm(proj[B:2 * B, H:2 * H] + vslab_ref[3:4, 0:H],
                    vslab_ref[4:5, 0:H], vslab_ref[5:6, 0:H])
    hi = jnp.maximum(hi, 0.0)
    ht = jnp.maximum(ht, 0.0)

    # x = concat([image_proj, text_proj], dim=1); GCN layer 1 as ONE dot against the
    # full wg1 slab view.  GNN channels are zero-padded to 128 lanes; padded columns
    # stay exactly zero through the zero-padded bias add and ReLU, so math is unchanged.
    # TODO(synk): on v6e/v7x the bias+ReLU stages could stay bf16 to halve vreg traffic;
    # kept f32 here for v5e portability (negligible at demo row counts).
    xcat = jnp.concatenate([hi, ht], axis=-1).astype(bf16)                        # (B, 2H)
    x = jnp.maximum(jnp.dot(xcat, wslab_ref[0:2 * H, :],
                            preferred_element_type=f32) + vslab_ref[6:7, :], 0.0)
    x = jnp.maximum(jnp.dot(x.astype(bf16), wslab_ref[LANE:2 * LANE, :],
                            preferred_element_type=f32) + vslab_ref[7:8, :], 0.0)
    x = jnp.maximum(jnp.dot(x.astype(bf16), wslab_ref[2 * LANE:3 * LANE, :],
                            preferred_element_type=f32) + vslab_ref[8:9, :], 0.0)

    # F.dropout(p=0.2) -> identity in eval.  global_mean_pool(x, batch): build the
    # one-hot pooling matrix in-kernel (bf16, single cast) from the tiny int32 batch
    # vector; divide goes to the EUP via approx reciprocal.
    # TODO(synk): for large node/graph counts, tile the node axis with a row-parallel
    # grid and accumulate per-graph sums into a (G,128) f32 scratch (avoids the dense
    # O(G*N) one-hot and keeps the footprint inside v7x's 64 MiB VMEM, using both TCs).
    G = out_ref.shape[0]
    N = batch_ref.shape[1]
    gids = jax.lax.broadcasted_iota(jnp.int32, (G, N), 0)
    cmp = batch_ref[...] == gids
    onehot = cmp.astype(bf16)
    counts = jnp.maximum(jnp.sum(cmp.astype(f32), axis=1, keepdims=True), 1.0)
    pooled = (jnp.dot(onehot, x.astype(bf16), preferred_element_type=f32)
              * pl.reciprocal(counts, approx=True))

    # Classifier Linear with eval-mode BatchNorm1d folded into its weight/bias;
    # lane-dense (G, 128) store -- wrapper slices the first NUM_CLASSES columns.
    out_ref[...] = (jnp.dot(pooled.astype(bf16), wslab_ref[3 * LANE:4 * LANE, :],
                            preferred_element_type=f32) + vslab_ref[9:10, :])


def _pad2(a, rows, cols):
    return jnp.pad(a, ((0, rows - a.shape[0]), (0, cols - a.shape[1])))


def init_params(key):
    """Deterministic synthetic parameters with the shapes implied by __init__."""
    keys = jax.random.split(key, 14)
    H = HIDDEN

    def lin(k, din, dout):
        k1, k2 = jax.random.split(k)
        bound = 1.0 / (din ** 0.5)
        w = jax.random.uniform(k1, (din, dout), jnp.float32, -bound, bound)
        b = jax.random.uniform(k2, (1, dout), jnp.float32, -bound, bound)
        return w, b

    wi, bi = lin(keys[0], CLIP_DIM, H)           # image_proj Linear(512, H)
    wt, bt = lin(keys[1], CLIP_DIM, H)           # text_proj  Linear(512, H)
    wg1, bg1 = lin(keys[2], 2 * H, H)            # GCNConv(2H, H)
    wg2, bg2 = lin(keys[3], H, 2 * H)            # GCNConv(H, 2H)
    wg3, bg3 = lin(keys[4], 2 * H, H)            # GCNConv(2H, H)
    wc, bc = lin(keys[5], H, NUM_CLASSES)        # classifier Linear(H, num_classes)

    return dict(
        wi=wi, bi=bi,
        gi=1.0 + 0.1 * jax.random.normal(keys[6], (1, H)),
        bei=0.1 * jax.random.normal(keys[7], (1, H)),
        wt=wt, bt=bt,
        gt=1.0 + 0.1 * jax.random.normal(keys[8], (1, H)),
        bet=0.1 * jax.random.normal(keys[9], (1, H)),
        wg1=wg1, bg1=bg1, wg2=wg2, bg2=bg2, wg3=wg3, bg3=bg3,
        wc=wc, bc=bc,
        # BatchNorm1d eval-mode running stats / affine (non-trivial to exercise folding)
        bng=1.0 + 0.1 * jax.random.normal(keys[10], (1, NUM_CLASSES)),
        bnb=0.1 * jax.random.normal(keys[11], (1, NUM_CLASSES)),
        bnm=0.1 * jax.random.normal(keys[12], (1, NUM_CLASSES)),
        bnv=jax.random.uniform(keys[13], (1, NUM_CLASSES), jnp.float32, 0.5, 1.5),
    )


def joint_forward(image_features, text_features, params, batch, num_graphs):
    """Returns (logits, image_features, text_features) like the PyTorch module."""
    p = params
    H = HIDDEN
    B = image_features.shape[0]
    bf16 = jnp.bfloat16

    # Each sample is a single-node graph in the reference (node_x = x[i].unsqueeze(0)),
    # so the node count must equal the batch size.
    assert batch.shape[0] == B, "batch vector must have one entry per sample/node"

    # Fold eval-mode BatchNorm1d into the classifier (trace-time algebra, f32).
    scale = p['bng'] * jax.lax.rsqrt(p['bnv'] + BN_EPS)             # (1, C)
    wc_fold = p['wc'] * scale                                       # (H, C)
    bc_fold = (p['bc'] - p['bnm']) * scale + p['bnb']               # (1, C)

    # Fused projection operands: row-stacked features, lane-concatenated weights.
    feats = jnp.concatenate([image_features, text_features], axis=0).astype(bf16)  # (2B, 512)
    wproj = jnp.concatenate([p['wi'], p['wt']], axis=1).astype(bf16)                # (512, 2H)

    # One bf16 weight slab (GNN1 / GNN2 / GNN3 / folded classifier at 128-row offsets)
    # and one f32 vector slab -> 5 input DMAs total instead of ~12.
    wslab = jnp.concatenate(
        [_pad2(p['wg1'], LANE, LANE), _pad2(p['wg2'], LANE, LANE),
         _pad2(p['wg3'], LANE, LANE), _pad2(wc_fold, LANE, LANE)], axis=0).astype(bf16)
    vslab = jnp.concatenate(
        [_pad2(p['bi'], 1, LANE), _pad2(p['gi'], 1, LANE), _pad2(p['bei'], 1, LANE),
         _pad2(p['bt'], 1, LANE), _pad2(p['gt'], 1, LANE), _pad2(p['bet'], 1, LANE),
         _pad2(p['bg1'], 1, LANE), _pad2(p['bg2'], 1, LANE), _pad2(p['bg3'], 1, LANE),
         _pad2(bc_fold, 1, LANE)], axis=0).astype(jnp.float32)

    args = (feats, wproj, wslab, vslab, batch.astype(jnp.int32).reshape(1, B))

    flops = int(2 * (2 * B) * CLIP_DIM * (2 * H)     # fused projection matmul
                + 2 * B * (2 * H) * LANE             # GNN layer 1
                + 2 * 2 * B * LANE * LANE            # GNN layers 2, 3
                + 2 * num_graphs * B * LANE          # mean pool
                + 2 * num_graphs * LANE * LANE)      # classifier
    bytes_accessed = int(sum(int(a.size) * a.dtype.itemsize for a in args)
                         + num_graphs * LANE * 4)

    vmem = lambda: pl.BlockSpec(memory_space=pltpu.MemorySpace.VMEM)
    # TODO(synk): for production node counts, add a row-tiled grid with
    # dimension_semantics=("parallel", ...) so both v7x TensorCores are used, with the
    # pooling accumulated node-tile by node-tile; re-derive vmem_limit_bytes against
    # v7x's 64 MiB physical VMEM including double-buffered tiles.  At the demo shapes
    # the grid-less call uses well under 1 MiB of VMEM.
    padded_logits = pl.pallas_call(
        joint_model_kernel,
        out_shape=jax.ShapeDtypeStruct((num_graphs, LANE), jnp.float32),
        in_specs=[vmem() for _ in args],
        out_specs=vmem(),
        compiler_params=pltpu.CompilerParams(vmem_limit_bytes=32 * 1024 * 1024),
        cost_estimate=pl.CostEstimate(flops=flops, transcendentals=2 * B + num_graphs,
                                      bytes_accessed=bytes_accessed),
    )(*args)
    logits = padded_logits[:, :NUM_CLASSES]
    return logits, image_features, text_features


def reference_forward(image_features, text_features, params, batch, num_graphs):
    """Pure-JAX reference of the module math (same bf16-operand / f32-acc precision)."""
    p = params
    f32 = jnp.float32
    bf16 = jnp.bfloat16
    dot = lambda a, b: jnp.dot(a.astype(bf16), b.astype(bf16), preferred_element_type=f32)

    def ln(h, g, b):
        mu = jnp.mean(h, -1, keepdims=True)
        var = jnp.mean((h - mu) ** 2, -1, keepdims=True)
        return (h - mu) / jnp.sqrt(var + LN_EPS) * g + b

    hi = jnp.maximum(ln(dot(image_features, p['wi']) + p['bi'], p['gi'], p['bei']), 0.0)
    ht = jnp.maximum(ln(dot(text_features, p['wt']) + p['bt'], p['gt'], p['bet']), 0.0)
    x = jnp.concatenate([hi, ht], axis=1)
    x = jnp.maximum(dot(x, p['wg1']) + p['bg1'], 0.0)
    x = jnp.maximum(dot(x, p['wg2']) + p['bg2'], 0.0)
    x = jnp.maximum(dot(x, p['wg3']) + p['bg3'], 0.0)
    onehot = (batch[None, :] == jnp.arange(num_graphs)[:, None]).astype(f32)
    counts = jnp.maximum(onehot.sum(1, keepdims=True), 1.0)
    pooled = dot(onehot, x) / counts
    logits = dot(pooled, p['wc']) + p['bc']
    return (logits - p['bnm']) / jnp.sqrt(p['bnv'] + BN_EPS) * p['bng'] + p['bnb']


if __name__ == "__main__":
    key = jax.random.PRNGKey(0)
    kp, ki, kt = jax.random.split(key, 3)
    params = init_params(kp)

    B = 2  # batch of samples; each is a single-node graph (node_x = x[i].unsqueeze(0))
    image_features = jax.random.normal(ki, (B, CLIP_DIM), jnp.float32)  # frozen CLIP image feats
    text_features = jax.random.normal(kt, (B, CLIP_DIM), jnp.float32)   # frozen CLIP text feats
    batch = jnp.arange(B, dtype=jnp.int32)  # node -> graph assignment for global_mean_pool

    # TODO(synk): running the frozen CLIP backbone / CLIPProcessor itself is out of scope;
    # its pooled 512-d embeddings are supplied as inputs (reference wraps it in no_grad()).
    logits, img_out, txt_out = joint_forward(image_features, text_features, params, batch, B)
    logits = jax.block_until_ready(logits)

    ref = reference_forward(image_features, text_features, params, batch, B)
    assert logits.shape == (B, NUM_CLASSES)
    # bf16 MXU operands + BN->classifier fold + approx reciprocal loosen tolerance slightly.
    assert jnp.allclose(logits, ref, atol=2e-2, rtol=2e-2)
    print("KERNEL_OK")
</pallas_src>

<mosaic_0001>
module attributes {stable_mosaic.version = 11 : i64} {
  func.func @joint_model_kernel(%arg0: memref<4x512xbf16, #tpu.memory_space<vmem>>, %arg1: memref<512x64xbf16, #tpu.memory_space<vmem>>, %arg2: memref<512x128xbf16, #tpu.memory_space<vmem>>, %arg3: memref<10x128xf32, #tpu.memory_space<vmem>>, %arg4: memref<1x2xi32, #tpu.memory_space<vmem>>, %arg5: memref<2x128xf32, #tpu.memory_space<vmem>>) attributes {dimension_semantics = [], scalar_prefetch = 0 : i64, scratch_operands = 0 : i64, tpu.core_type = #tpu.core_type<tc>} {
    %c0 = arith.constant 0 : index
    %c0_0 = arith.constant 0 : index
    %0 = vector.load %arg0[%c0, %c0_0] : memref<4x512xbf16, #tpu.memory_space<vmem>>, vector<4x512xbf16>
    %c0_1 = arith.constant 0 : index
    %c0_2 = arith.constant 0 : index
    %1 = vector.load %arg1[%c0_1, %c0_2] : memref<512x64xbf16, #tpu.memory_space<vmem>>, vector<512x64xbf16>
    %cst = arith.constant dense<0.000000e+00> : vector<4x64xf32>
    %2 = tpu.matmul %0, %1, %cst {dimension_numbers = #tpu.dot_dimension_numbers<[1], [0], [0], [1], [0, 0, 1, 1], [], []>} : vector<4x512xbf16>, vector<512x64xbf16>, vector<4x64xf32> -> vector<4x64xf32>
    %3 = vector.extract_strided_slice %2 {offsets = [0, 0], sizes = [2, 32], strides = [1, 1]} : vector<4x64xf32> to vector<2x32xf32>
    %c0_3 = arith.constant 0 : index
    %c0_4 = arith.constant 0 : index
    %4 = vector.load %arg3[%c0_3, %c0_4] : memref<10x128xf32, #tpu.memory_space<vmem>>, vector<1x32xf32>
    %5 = vector.broadcast %4 : vector<1x32xf32> to vector<2x32xf32>
    %6 = arith.addf %3, %5 : vector<2x32xf32>
    %c1 = arith.constant 1 : index
    %c0_5 = arith.constant 0 : index
    %7 = vector.load %arg3[%c1, %c0_5] : memref<10x128xf32, #tpu.memory_space<vmem>>, vector<1x32xf32>
    %c2 = arith.constant 2 : index
    %c0_6 = arith.constant 0 : index
    %8 = vector.load %arg3[%c2, %c0_6] : memref<10x128xf32, #tpu.memory_space<vmem>>, vector<1x32xf32>
    %cst_7 = arith.constant dense<0.000000e+00> : vector<2xf32>
    %9 = vector.multi_reduction <add>, %6, %cst_7 [1] : vector<2x32xf32> to vector<2xf32>
    %10 = vector.shape_cast %9 : vector<2xf32> to vector<2x1xf32>
    %cst_8 = arith.constant 3.200000e+01 : f32
    %11 = vector.broadcast %cst_8 : f32 to vector<2x1xf32>
    %12 = arith.divf %10, %11 : vector<2x1xf32>
    %13 = vector.broadcast %12 : vector<2x1xf32> to vector<2x32xf32>
    %14 = arith.subf %6, %13 : vector<2x32xf32>
    %15 = arith.mulf %14, %14 : vector<2x32xf32>
    %cst_9 = arith.constant dense<0.000000e+00> : vector<2xf32>
    %16 = vector.multi_reduction <add>, %15, %cst_9 [1] : vector<2x32xf32> to vector<2xf32>
    %17 = vector.shape_cast %16 : vector<2xf32> to vector<2x1xf32>
    %cst_10 = arith.constant 3.200000e+01 : f32
    %18 = vector.broadcast %cst_10 : f32 to vector<2x1xf32>
    %19 = arith.divf %17, %18 : vector<2x1xf32>
    %20 = vector.broadcast %12 : vector<2x1xf32> to vector<2x32xf32>
    %21 = arith.subf %6, %20 : vector<2x32xf32>
    %cst_11 = arith.constant 9.99999974E-6 : f32
    %22 = vector.broadcast %cst_11 : f32 to vector<2x1xf32>
    %23 = arith.addf %19, %22 : vector<2x1xf32>
    %24 = math.rsqrt %23 : vector<2x1xf32>
    %25 = vector.broadcast %24 : vector<2x1xf32> to vector<2x32xf32>
    %26 = arith.mulf %21, %25 : vector<2x32xf32>
    %27 = vector.broadcast %7 : vector<1x32xf32> to vector<2x32xf32>
    %28 = arith.mulf %26, %27 : vector<2x32xf32>
    %29 = vector.broadcast %8 : vector<1x32xf32> to vector<2x32xf32>
    %30 = arith.addf %28, %29 : vector<2x32xf32>
    %31 = vector.extract_strided_slice %2 {offsets = [2, 32], sizes = [2, 32], strides = [1, 1]} : vector<4x64xf32> to vector<2x32xf32>
    %c3 = arith.constant 3 : index
    %c0_12 = arith.constant 0 : index
    %32 = vector.load %arg3[%c3, %c0_12] : memref<10x128xf32, #tpu.memory_space<vmem>>, vector<1x32xf32>
    %33 = vector.broadcast %32 : vector<1x32xf32> to vector<2x32xf32>
    %34 = arith.addf %31, %33 : vector<2x32xf32>
    %c4 = arith.constant 4 : index
    %c0_13 = arith.constant 0 : index
    %35 = vector.load %arg3[%c4, %c0_13] : memref<10x128xf32, #tpu.memory_space<vmem>>, vector<1x32xf32>
    %c5 = arith.constant 5 : index
    %c0_14 = arith.constant 0 : index
    %36 = vector.load %arg3[%c5, %c0_14] : memref<10x128xf32, #tpu.memory_space<vmem>>, vector<1x32xf32>
    %cst_15 = arith.constant dense<0.000000e+00> : vector<2xf32>
    %37 = vector.multi_reduction <add>, %34, %cst_15 [1] : vector<2x32xf32> to vector<2xf32>
    %38 = vector.shape_cast %37 : vector<2xf32> to vector<2x1xf32>
    %cst_16 = arith.constant 3.200000e+01 : f32
    %39 = vector.broadcast %cst_16 : f32 to vector<2x1xf32>
    %40 = arith.divf %38, %39 : vector<2x1xf32>
    %41 = vector.broadcast %40 : vector<2x1xf32> to vector<2x32xf32>
    %42 = arith.subf %34, %41 : vector<2x32xf32>
    %43 = arith.mulf %42, %42 : vector<2x32xf32>
    %cst_17 = arith.constant dense<0.000000e+00> : vector<2xf32>
    %44 = vector.multi_reduction <add>, %43, %cst_17 [1] : vector<2x32xf32> to vector<2xf32>
    %45 = vector.shape_cast %44 : vector<2xf32> to vector<2x1xf32>
    %cst_18 = arith.constant 3.200000e+01 : f32
    %46 = vector.broadcast %cst_18 : f32 to vector<2x1xf32>
    %47 = arith.divf %45, %46 : vector<2x1xf32>
    %48 = vector.broadcast %40 : vector<2x1xf32> to vector<2x32xf32>
    %49 = arith.subf %34, %48 : vector<2x32xf32>
    %cst_19 = arith.constant 9.99999974E-6 : f32
    %50 = vector.broadcast %cst_19 : f32 to vector<2x1xf32>
    %51 = arith.addf %47, %50 : vector<2x1xf32>
    %52 = math.rsqrt %51 : vector<2x1xf32>
    %53 = vector.broadcast %52 : vector<2x1xf32> to vector<2x32xf32>
    %54 = arith.mulf %49, %53 : vector<2x32xf32>
    %55 = vector.broadcast %35 : vector<1x32xf32> to vector<2x32xf32>
    %56 = arith.mulf %54, %55 : vector<2x32xf32>
    %57 = vector.broadcast %36 : vector<1x32xf32> to vector<2x32xf32>
    %58 = arith.addf %56, %57 : vector<2x32xf32>
    %cst_20 = arith.constant 0.000000e+00 : f32
    %59 = vector.broadcast %cst_20 : f32 to vector<2x32xf32>
    %60 = arith.maximumf %30, %59 : vector<2x32xf32>
    %cst_21 = arith.constant 0.000000e+00 : f32
    %61 = vector.broadcast %cst_21 : f32 to vector<2x32xf32>
    %62 = arith.maximumf %58, %61 : vector<2x32xf32>
    %63 = tpu.concatenate %60, %62 in 1 : vector<2x32xf32>, vector<2x32xf32> -> vector<2x64xf32>
    %64 = arith.truncf %63 : vector<2x64xf32> to vector<2x64xbf16>
    %c0_22 = arith.constant 0 : index
    %c0_23 = arith.constant 0 : index
    %65 = vector.load %arg2[%c0_22, %c0_23] : memref<512x128xbf16, #tpu.memory_space<vmem>>, vector<64x128xbf16>
    %cst_24 = arith.constant dense<0.000000e+00> : vector<2x128xf32>
    %66 = tpu.matmul %64, %65, %cst_24 {dimension_numbers = #tpu.dot_dimension_numbers<[1], [0], [0], [1], [0, 0, 1, 1], [], []>} : vector<2x64xbf16>, vector<64x128xbf16>, vector<2x128xf32> -> vector<2x128xf32>
    %c6 = arith.constant 6 : index
    %c0_25 = arith.constant 0 : index
    %67 = vector.load %arg3[%c6, %c0_25] : memref<10x128xf32, #tpu.memory_space<vmem>>, vector<1x128xf32>
    %68 = vector.broadcast %67 : vector<1x128xf32> to vector<2x128xf32>
    %69 = arith.addf %66, %68 : vector<2x128xf32>
    %cst_26 = arith.constant 0.000000e+00 : f32
    %70 = vector.broadcast %cst_26 : f32 to vector<2x128xf32>
    %71 = arith.maximumf %69, %70 : vector<2x128xf32>
    %72 = arith.truncf %71 : vector<2x128xf32> to vector<2x128xbf16>
    %c128 = arith.constant 128 : index
    %c0_27 = arith.constant 0 : index
    %73 = vector.load %arg2[%c128, %c0_27] : memref<512x128xbf16, #tpu.memory_space<vmem>>, vector<128x128xbf16>
    %cst_28 = arith.constant dense<0.000000e+00> : vector<2x128xf32>
    %74 = tpu.matmul %72, %73, %cst_28 {dimension_numbers = #tpu.dot_dimension_numbers<[1], [0], [0], [1], [0, 0, 1, 1], [], []>} : vector<2x128xbf16>, vector<128x128xbf16>, vector<2x128xf32> -> vector<2x128xf32>
    %c7 = arith.constant 7 : index
    %c0_29 = arith.constant 0 : index
    %75 = vector.load %arg3[%c7, %c0_29] : memref<10x128xf32, #tpu.memory_space<vmem>>, vector<1x128xf32>
    %76 = vector.broadcast %75 : vector<1x128xf32> to vector<2x128xf32>
    %77 = arith.addf %74, %76 : vector<2x128xf32>
    %cst_30 = arith.constant 0.000000e+00 : f32
    %78 = vector.broadcast %cst_30 : f32 to vector<2x128xf32>
    %79 = arith.maximumf %77, %78 : vector<2x128xf32>
    %80 = arith.truncf %79 : vector<2x128xf32> to vector<2x128xbf16>
    %c256 = arith.constant 256 : index
    %c0_31 = arith.constant 0 : index
    %81 = vector.load %arg2[%c256, %c0_31] : memref<512x128xbf16, #tpu.memory_space<vmem>>, vector<128x128xbf16>
    %cst_32 = arith.constant dense<0.000000e+00> : vector<2x128xf32>
    %82 = tpu.matmul %80, %81, %cst_32 {dimension_numbers = #tpu.dot_dimension_numbers<[1], [0], [0], [1], [0, 0, 1, 1], [], []>} : vector<2x128xbf16>, vector<128x128xbf16>, vector<2x128xf32> -> vector<2x128xf32>
    %c8 = arith.constant 8 : index
    %c0_33 = arith.constant 0 : index
    %83 = vector.load %arg3[%c8, %c0_33] : memref<10x128xf32, #tpu.memory_space<vmem>>, vector<1x128xf32>
    %84 = vector.broadcast %83 : vector<1x128xf32> to vector<2x128xf32>
    %85 = arith.addf %82, %84 : vector<2x128xf32>
    %cst_34 = arith.constant 0.000000e+00 : f32
    %86 = vector.broadcast %cst_34 : f32 to vector<2x128xf32>
    %87 = arith.maximumf %85, %86 : vector<2x128xf32>
    %88 = tpu.iota {dimensions = array<i32: 0>} : vector<2x2xi32>
    %c0_35 = arith.constant 0 : index
    %c0_36 = arith.constant 0 : index
    %89 = vector.load %arg4[%c0_35, %c0_36] : memref<1x2xi32, #tpu.memory_space<vmem>>, vector<1x2xi32>
    %90 = vector.broadcast %89 : vector<1x2xi32> to vector<2x2xi32>
    %91 = arith.cmpi eq, %90, %88 : vector<2x2xi32>
    %92 = arith.extui %91 : vector<2x2xi1> to vector<2x2xi32>
    %93 = arith.sitofp %92 : vector<2x2xi32> to vector<2x2xf32>
    %94 = arith.truncf %93 : vector<2x2xf32> to vector<2x2xbf16>
    %95 = arith.extui %91 : vector<2x2xi1> to vector<2x2xi32>
    %96 = arith.sitofp %95 : vector<2x2xi32> to vector<2x2xf32>
    %cst_37 = arith.constant dense<0.000000e+00> : vector<2xf32>
    %97 = vector.multi_reduction <add>, %96, %cst_37 [1] : vector<2x2xf32> to vector<2xf32>
    %98 = vector.shape_cast %97 : vector<2xf32> to vector<2x1xf32>
    %cst_38 = arith.constant 1.000000e+00 : f32
    %99 = vector.broadcast %cst_38 : f32 to vector<2x1xf32>
    %100 = arith.maximumf %98, %99 : vector<2x1xf32>
    %101 = arith.truncf %87 : vector<2x128xf32> to vector<2x128xbf16>
    %cst_39 = arith.constant dense<0.000000e+00> : vector<2x128xf32>
    %102 = tpu.matmul %94, %101, %cst_39 {dimension_numbers = #tpu.dot_dimension_numbers<[1], [0], [0], [1], [0, 0, 1, 1], [], []>} : vector<2x2xbf16>, vector<2x128xbf16>, vector<2x128xf32> -> vector<2x128xf32>
    %103 = tpu.reciprocal %100 {approx = true} : vector<2x1xf32> -> vector<2x1xf32>
    %104 = vector.broadcast %103 : vector<2x1xf32> to vector<2x128xf32>
    %105 = arith.mulf %102, %104 : vector<2x128xf32>
    %106 = arith.truncf %105 : vector<2x128xf32> to vector<2x128xbf16>
    %c384 = arith.constant 384 : index
    %c0_40 = arith.constant 0 : index
    %107 = vector.load %arg2[%c384, %c0_40] : memref<512x128xbf16, #tpu.memory_space<vmem>>, vector<128x128xbf16>
    %cst_41 = arith.constant dense<0.000000e+00> : vector<2x128xf32>
    %108 = tpu.matmul %106, %107, %cst_41 {dimension_numbers = #tpu.dot_dimension_numbers<[1], [0], [0], [1], [0, 0, 1, 1], [], []>} : vector<2x128xbf16>, vector<128x128xbf16>, vector<2x128xf32> -> vector<2x128xf32>
    %c9 = arith.constant 9 : index
    %c0_42 = arith.constant 0 : index
    %109 = vector.load %arg3[%c9, %c0_42] : memref<10x128xf32, #tpu.memory_space<vmem>>, vector<1x128xf32>
    %110 = vector.broadcast %109 : vector<1x128xf32> to vector<2x128xf32>
    %111 = arith.addf %108, %110 : vector<2x128xf32>
    %c0_43 = arith.constant 0 : index
    %c0_44 = arith.constant 0 : index
    %112 = vector.load %arg5[%c0_43, %c0_44] : memref<2x128xf32, #tpu.memory_space<vmem>>, vector<2x128xf32>
    tpu.vector_store %arg5[%c0_43, %c0_44], %111 {strides = array<i32>} : memref<2x128xf32, #tpu.memory_space<vmem>>, vector<2x128xf32>,
    return
  }
}

</mosaic_0001>

<bundles_post_ra>
// kernel: tpu_custom_call.1
= control target key start
LH: loop header
LB: loop body
LE: loop exit
PB: predicated region body
PF: predicated region fallthrough
CT: control target
= control target key end

     0   :  { %v92_v29 = vlaneseq  ;;  %v1297_v35 = vmov 1983009808   ;;  %v1298_v38 = vmov 0.0   ;;  %s1299_s11 = smov 32   ;;  %s1610_s0 = inlined_call_operand.vmem [shape: bf16[4,512], index: 0, kind: input, shape index: {}]   ;;  %s1611_s1 = inlined_call_operand.vmem [shape: bf16[512,64], index: 1, kind: input, shape index: {}]   ;;  %s1612_s2 = inlined_call_operand.vmem [shape: bf16[512,128], index: 2, kind: input, shape index: {}]   ;;  %s1613_s3 = inlined_call_operand.vmem [shape: f32[10,128], index: 3, kind: input, shape index: {}]   ;;  %s1614_s4 = inlined_call_operand.vmem [shape: s32[1,2], index: 4, kind: input, shape index: {}]   ;;  %s1615_s5 = inlined_call_operand.hbm [shape: f32[2,128], index: 5, kind: output, shape index: {}]  }
   0x1   :  { %v1206_v0 = vld [vmem:[%s1611_s1 + $0x40] sm:$0xff]   ;;  %v1210_v4 = vld [vmem:[%s1611_s1 + $0x48] sm:$0xff]   ;;  %v1214_v8 = vld [vmem:[%s1611_s1 + $0x50] sm:$0xff]   ;;  %v90_v36 = vunpack.c.l.s4 %v1297_v35 }
   0x2   :  { %v1207_v1 = vld [vmem:[%s1611_s1 + $0xc0] sm:$0xff]   ;;  %1044 = vmatprep.subr.bf16.mxu0 %v1206_v0  ;;  %v1211_v5 = vld [vmem:[%s1611_s1 + $0xc8] sm:$0xff]   ;;  %v1215_v9 = vld [vmem:[%s1611_s1 + $0xd0] sm:$0xff]   ;;  %v1432_v34 = vshrl.u32 %v92_v29, 7 }
   0x3   :  { %v1208_v2 = vld [vmem:[%s1611_s1] sm:$0xff]   ;;  %1066 = vmatprep.subr.bf16.mxu1 %v1207_v1  ;;  %v1212_v6 = vld [vmem:[%s1611_s1 + $0x8] sm:$0xff]   ;;  %v1216_v10 = vld [vmem:[%s1611_s1 + $0x10] sm:$0xff]   ;;  %v91_v39 = vunpack.c.0.s8 %v90_v36 }
   0x4   :  { %v1209_v3 = vld [vmem:[%s1611_s1 + $0x80] sm:$0xff]   ;;  %1045 = vmatpush3.bf16.msra.mxu0 %v1208_v2  ;;  %v1213_v7 = vld [vmem:[%s1611_s1 + $0x88] sm:$0xff]   ;;  %v1217_v11 = vld [vmem:[%s1611_s1 + $0x90] sm:$0xff]  }
   0x5   :  { %1067 = vmatpush3.bf16.msra.mxu1 %v1209_v3  ;;  %1046 = vmatprep.subr.bf16.mxu0 %v1210_v4  ;;  %v1218_v12 = vld [vmem:[%s1611_s1 + $0x58] sm:$0xff]   ;;  %v1222_v16 = vld [vmem:[%s1611_s1 + $0x60] sm:$0xff]   ;;  %v1226_v20 = vld [vmem:[%s1611_s1 + $0x68] sm:$0xff]   ;;  %v94_v41 = vsub.s32 %v91_v39, %v1432_v34 }
   0x6   :  { %1068 = vmatprep.subr.bf16.mxu1 %v1211_v5  ;;  %v1219_v13 = vld [vmem:[%s1611_s1 + $0xd8] sm:$0xff]   ;;  %v1223_v17 = vld [vmem:[%s1611_s1 + $0xe0] sm:$0xff]   ;;  %v1227_v21 = vld [vmem:[%s1611_s1 + $0xe8] sm:$0xff]  }
   0x7   :  { %v1220_v14 = vld [vmem:[%s1611_s1 + $0x18] sm:$0xff]   ;;  %v1224_v18 = vld [vmem:[%s1611_s1 + $0x20] sm:$0xff]   ;;  %v1228_v22 = vld [vmem:[%s1611_s1 + $0x28] sm:$0xff]  }
   0x8   :  { %1047 = vmatpush3.bf16.msra.mxu0 %v1212_v6  ;;  %v1221_v15 = vld [vmem:[%s1611_s1 + $0x98] sm:$0xff]   ;;  %v1225_v19 = vld [vmem:[%s1611_s1 + $0xa0] sm:$0xff]   ;;  %v1229_v23 = vld [vmem:[%s1611_s1 + $0xa8] sm:$0xff]  }
   0x9   :  { %1069 = vmatpush3.bf16.msra.mxu1 %v1213_v7  ;;  %1048 = vmatprep.subr.bf16.mxu0 %v1214_v8  ;;  %v1230_v24 = vld [vmem:[%s1611_s1 + $0x70] sm:$0xff]   ;;  %v1234_v28 = vld [vmem:[%s1611_s1 + $0x78] sm:$0xff]   ;;  %v22_v33 = vld [vmem:[%s1610_s0] sm:$0xff] }
   0xa   :  { %1070 = vmatprep.subr.bf16.mxu1 %v1215_v9  ;;  %v1231_v25 = vld [vmem:[%s1611_s1 + $0xf0] sm:$0xff]   ;;  %v1235_v30 = vld [vmem:[%s1611_s1 + $0xf8] sm:$0xff]   ;;  %v1005_v37 = vld [vmem:[%s1613_s3 + $0x3] ss:$0 sm:$0xff]  ;;  %v88_v40 = vcombine.high %v22_v33, %v22_v33  ;;  %v95_v42 = vrot.slane %v22_v33, %v94_v41 }
   0xb   :  { %v1232_v26 = vld [vmem:[%s1611_s1 + $0x30] sm:$0xff]   ;;  %v1236_v31 = vld [vmem:[%s1611_s1 + $0x38] sm:$0xff]   ;;  %420 = vrot.lane.b32.xlu0 %v1005_v37, %s1299_s11 }
   0xc   :  { %1049 = vmatpush3.bf16.msra.mxu0 %v1216_v10  ;;  %v1233_v27 = vld [vmem:[%s1611_s1 + $0xb0] sm:$0xff]   ;;  %v1237_v32 = vld [vmem:[%s1611_s1 + $0xb8] sm:$0xff]   ;;  %v102_v43 = vrot.slane %v88_v40, %v94_v41  ;;  %v103_v44 = vcombine.high %v95_v42, %v95_v42 }
   0xd   :  { %1071 = vmatpush3.bf16.msra.mxu1 %v1217_v11  ;;  %1050 = vmatprep.subr.bf16.mxu0 %v1218_v12 }
   0xe   :  { %1072 = vmatprep.subr.bf16.mxu1 %v1219_v13  ;;  %v104_v45 = vcombine.high %v102_v43, %v102_v43  ;;  %333 = vmatprep.mubr.bf16.mxu0 %v103_v44 }
  0x10   :  { %1051 = vmatpush3.bf16.msra.mxu0 %v1220_v14  ;;  %373 = vmatprep.mubr.bf16.mxu1 %v104_v45 }
  0x11   :  { %1073 = vmatpush3.bf16.msra.mxu1 %v1221_v15  ;;  %1052 = vmatprep.subr.bf16.mxu0 %v1222_v16 }
  0x12   :  { %1074 = vmatprep.subr.bf16.mxu1 %v1223_v17 }
  0x14   :  { %1053 = vmatpush3.bf16.msra.mxu0 %v1224_v18 }
  0x15   :  { %1075 = vmatpush3.bf16.msra.mxu1 %v1225_v19  ;;  %1054 = vmatprep.subr.bf16.mxu0 %v1226_v20 }
  0x16   :  { %1076 = vmatprep.subr.bf16.mxu1 %v1227_v21 }
  0x18   :  { %1055 = vmatpush3.bf16.msra.mxu0 %v1228_v22 }
  0x19   :  { %1077 = vmatpush3.bf16.msra.mxu1 %v1229_v23  ;;  %1056 = vmatprep.subr.bf16.mxu0 %v1230_v24 }
  0x1a   :  { %1078 = vmatprep.subr.bf16.mxu1 %v1231_v25 }
  0x1c   :  { %1057 = vmatpush3.bf16.msra.mxu0 %v1232_v26 }
  0x1d   :  { %1079 = vmatpush3.bf16.msra.mxu1 %v1233_v27  ;;  %1058 = vmatprep.subr.bf16.mxu0 %v1234_v28 }
  0x1e   :  { %1080 = vmatprep.subr.bf16.mxu1 %v1235_v30 }
  0x20   :  { %1059 = vmatpush3.bf16.msra.mxu0 %v1236_v31 }
  0x21   :  { %1081 = vmatpush3.bf16.msra.mxu1 %v1237_v32  ;;  %1122 = vmatprep.subr.bf16.mxu0 %v1298_v38 }
  0x22   :  { %1134 = vmatprep.subr.bf16.mxu1 %v1298_v38 }
  0x23   :  { %334 = vmatmul.mubr.bf16.vlgmr.msra.gmra.mrb[0].mxu0 %v95_v42 }
  0x24   :  { %374 = vmatmul.mubr.bf16.vlgmr.msra.gmra.mrb[0].mxu1 %v102_v43 }
  0x25   :  { %10 = vsyncpa [#allocation3], 0  ;;  %s1300_s0 = smov 96   ;;  %vm430_vm0 = vcmask 257026   ;;  %v1002_v59 = vld [vmem:[%s1613_s3] ss:$0 sm:$0xff] }
  0x26   :  { %vm389_vm1 = vcmask 254976   ;;  %v1006_v0 = vld [vmem:[%s1613_s3 + $0x4] ss:$0 sm:$0xff]  ;;  %v1007_v12 = vld [vmem:[%s1613_s3 + $0x5] ss:$0 sm:$0xff]  ;;  %v1240_v14 = vld [vmem:[%s1612_s2 + $0x8] sm:$0xff]  }
  0x27   :  { %v1239_v13 = vld [vmem:[%s1612_s2] sm:$0xff]   ;;  %v1241_v15 = vld [vmem:[%s1612_s2 + $0x10] sm:$0xff]   ;;  %v1242_v16 = vld [vmem:[%s1612_s2 + $0x18] sm:$0xff]   ;;  %vm1301_vm2 = vmmov 0   ;;  %vm471_vm3 = vcmask 261120   ;;  %vm511_vm4 = vcmask 523264  }
  0x28   :  { %1123 = vmatpush3.bf16.msra.mxu0 %v1239_v13  ;;  %1130 = vmatprep.mubr.msk.bf16.mxu0 %vm1301_vm2, %v1298_v38  ;;  %v1243_v17 = vld [vmem:[%s1612_s2 + $0x40] sm:$0xff]   ;;  %v1244_v18 = vld [vmem:[%s1612_s2 + $0x48] sm:$0xff]   ;;  %v1245_v19 = vld [vmem:[%s1612_s2 + $0x50] sm:$0xff]   ;;  %vm789_vm6 = vcmask 9216   ;;  %vm799_vm7 = vcmask 1040384   ;;  %vm795_vm8 = vcmask 15360  }
  0x29   :  { %1124 = vmatprep.subr.bf16.mxu0 %v1298_v38  ;;  %1150 = vmatprep.mubr.msk.bf16.mxu1 %vm1301_vm2, %v1298_v38  ;;  %v1246_v20 = vld [vmem:[%s1612_s2 + $0x58] sm:$0xff]   ;;  %v1247_v21 = vld [vmem:[%s1612_s2 + $0x60] sm:$0xff]   ;;  %v1248_v22 = vld [vmem:[%s1612_s2 + $0x68] sm:$0xff]   ;;  %s1302_s7 = smov [#allocation2]  }
  0x2a   :  { %1135 = vmatpush3.bf16.msra.mxu1 %v1243_v17  ;;  %v1003_v32 = vld [vmem:[%s1613_s3 + $0x1] ss:$0 sm:$0xff]  ;;  %v1004_v37 = vld [vmem:[%s1613_s3 + $0x2] ss:$0 sm:$0xff]  ;;  %v1264_v17 = vld [vmem:[%s1612_s2 + $0xe8] sm:$0xff]   ;;  %s962_s8 = sshll.u32 %s1302_s7, 4  ;;  %s963_s8 = int_to_ptr.vmem [resolvable:$true] %s962_s8 }
  0x2b   :  { %1136 = vmatprep.subr.bf16.mxu1 %v1298_v38  ;;  %p1278_p1 = scmp.lt.s32.totalorder %s963_s8, %s963_s8 }
  0x2c   :  { %1125 = vmatpush3.bf16.msra.mxu0 %v1240_v14  ;;  %v1260_v14 = vld [vmem:[%s1612_s2 + $0xc8] sm:$0xff]  }
  0x2d   :  { %1126 = vmatprep.subr.bf16.mxu0 %v1298_v38 }
  0x2e   :  { %1137 = vmatpush3.bf16.msra.mxu1 %v1244_v18  ;;  %v1265_v18 = vld [vmem:[%s1612_s2 + $0xf0] sm:$0xff]  }
  0x2f   :  { %1138 = vmatprep.subr.bf16.mxu1 %v1298_v38 }
  0x30   :  { %1127 = vmatpush3.bf16.msra.mxu0 %v1241_v15  ;;  %v1262_v15 = vld [vmem:[%s1612_s2 + $0xd8] sm:$0xff]  }
  0x31   :  { %1128 = vmatprep.subr.bf16.mxu0 %v1298_v38 }
  0x32   :  { %1139 = vmatpush3.bf16.msra.mxu1 %v1245_v19  ;;  %v1023_v19 = vld [vmem:[%s1613_s3 + $0x8] ss:$0 sm:$0xff] }
  0x33   :  { %1140 = vmatprep.subr.bf16.mxu1 %v1298_v38 }
  0x34   :  { %1129 = vmatpush3.bf16.msra.mxu0 %v1242_v16  ;;  %v1263_v16 = vld [vmem:[%s1612_s2 + $0xe0] sm:$0xff]  }
  0x35   :  { %1154 = vmatprep.subr.bf16.mxu0 %v1298_v38 }
  0x36   :  { %1141 = vmatpush3.bf16.msra.mxu1 %v1246_v20 }
  0x37   :  { %1142 = vmatprep.subr.bf16.mxu1 %v1298_v38 }
  0x3a   :  { %1143 = vmatpush3.bf16.msra.mxu1 %v1247_v21 }
  0x3b   :  { %1144 = vmatprep.subr.bf16.mxu1 %v1298_v38 }
  0x3e   :  { %1145 = vmatpush3.bf16.msra.mxu1 %v1248_v22 }
  0x3f   :  { %1146 = vmatprep.subr.bf16.mxu1 %v1298_v38 }
  0x7d   :  { %v421_v46 = vpop.permute.xlu0 %420 }
  0xf6   :  { %v1060_v47 = vpop.f32.mrb[0].mxu0 }
  0xf7   :  { %v1082_v48 = vpop.f32.mrb[0].mxu1  ;;  %v1061_v49 = vpop.f32.mrb[1].mxu0 }
  0xf8   :  { %v1083_v50 = vpop.f32.mrb[1].mxu1  ;;  %v1062_v51 = vadd.f32 %v1061_v49, %v1060_v47  ;;  %v1063_v53 = vpop.f32.mrb[2].mxu0  ;;  %v1250_v49 = vld [vmem:[%s1612_s2 + $0x78] sm:$0xff]  }
  0xf9   :  { %v1084_v52 = vadd.f32 %v1083_v50, %v1082_v48  ;;  %v1085_v54 = vpop.f32.mrb[2].mxu1  ;;  %v1064_v55 = vpop.f32.mrb[3].mxu0  ;;  %v1249_v48 = vld [vmem:[%s1612_s2 + $0x70] sm:$0xff]   ;;  %v1251_v50 = vld [vmem:[%s1612_s2 + $0x80] sm:$0xff]   ;;  %v1254_v53 = vld [vmem:[%s1612_s2 + $0x98] sm:$0xff]  }
  0xfa   :  { %v1086_v56 = vpop.f32.mrb[3].mxu1  ;;  %1147 = vmatpush3.bf16.msra.mxu1 %v1249_v48  ;;  %v1255_v54 = vld [vmem:[%s1612_s2 + $0xa0] sm:$0xff]   ;;  %v1256_v55 = vld [vmem:[%s1612_s2 + $0xa8] sm:$0xff]  }
  0xfb   :  { %v376_v57 = vadd.f32 %v1084_v52, %v1062_v51  ;;  %1148 = vmatprep.subr.bf16.mxu1 %v1298_v38  ;;  %v1252_v51 = vld [vmem:[%s1612_s2 + $0x88] sm:$0xff]   ;;  %v1253_v52 = vld [vmem:[%s1612_s2 + $0x90] sm:$0xff]   ;;  %v1008_v56 = vld [vmem:[%s1613_s3 + $0x6] ss:$0 sm:$0xff] }
  0xfd   :  { %v423_v58 = vadd.f32 %v421_v46, %v376_v57  ;;  %v386_v62 = vadd.f32 %v1002_v59, %v376_v57 }
  0xfe   :  { %1149 = vmatpush3.bf16.msra.mxu1 %v1250_v49 }
  0xff   :  { %427 = vrot.lane.b32.xlu0 %v423_v58, %s1300_s0  ;;  %v390_v63 = vsel %vm389_vm1, %v386_v62, 0.0  ;;  %1180 = vmatprep.subr.bf16.mxu1 %v1298_v38 }
 0x171   :  { %v428_v60 = vpop.permute.xlu0 %427 }
 0x172   :  { %v431_v61 = vsel %vm430_vm0, %v428_v60, 0.0 }
 0x173   :  { %432 = vadd.xlane.f32.xlu1 %v431_v61 }
 0x177   :  { %391 = vadd.xlane.f32.xlu1 %v390_v63 }
 0x188   :  { %453 = vrot.lane.b32.xlu1 %v1006_v0, %s1299_s11  ;;  %v1257_v0 = vld [vmem:[%s1612_s2 + $0xb0] sm:$0xff]  }
 0x200   :  { %v433_v1 = vpop.xlane.xlu1 %432 }
 0x201   :  { %v434_v2 = vmul.f32 0.03125, %v433_v1  ;;  %v1258_v1 = vld [vmem:[%s1612_s2 + $0xb8] sm:$0xff]  }
 0x203   :  { %v435_v3 = vsub.f32 %v423_v58, %v434_v2  ;;  %v1014_v2 = vld [vmem:[%s1613_s3 + $0x7] ss:$0 sm:$0xff] }
 0x204   :  { %v392_v5 = vpop.xlane.xlu1 %391 }
 0x205   :  { %v436_v4 = vmul.f32 %v435_v3, %v435_v3  ;;  %v394_v6 = vmul.f32 0.03125, %v392_v5 }
 0x207   :  { %438 = vrot.lane.b32.xlu0 %v436_v4, %s1300_s0  ;;  %v395_v7 = vsub.f32 %v386_v62, %v394_v6 }
 0x208   :  { %v454_v26 = vpop.permute.xlu1 %453 }
 0x209   :  { %v396_v8 = vmul.f32 %v395_v7, %v395_v7 }
 0x20b   :  { %v397_v9 = vsel %vm389_vm1, %v396_v8, 0.0 }
 0x226   :  { %398 = vadd.xlane.f32.xlu0 %v397_v9 }
 0x279   :  { %v439_v10 = vpop.permute.xlu0 %438 }
 0x27a   :  { %v441_v11 = vsel %vm430_vm0, %v439_v10, 0.0  ;;  %v1032_v10 = vld [vmem:[%s1614_s4] ss:$0 sm:$0xff] }
 0x27b   :  { %442 = vadd.xlane.f32.xlu1 %v441_v11  ;;  %vm785_vm5 = vcmp.eq.s32.totalorder %v1032_v10, %v1432_v34  ;;  %v1261_v34 = vld [vmem:[%s1612_s2 + $0xd0] sm:$0xff]  }
 0x27c   :  { %v1033_v11 = vsel %vm785_vm5, 1.0, %v1298_v38 }
 0x27d   :  { %v790_v13 = vsel %vm789_vm6, %v1033_v11, 0.0 }
 0x28c   :  { %462 = vrot.lane.b32.xlu1 %v1007_v12, %s1299_s11  ;;  %v1259_v12 = vld [vmem:[%s1612_s2 + $0xc0] sm:$0xff]  }
 0x2b0   :  { %791 = vadd.xlane.f32.xlu1 %v790_v13 }
 0x2b3   :  { %v399_v23 = vpop.xlane.xlu0 %398 }
 0x2b4   :  { %v400_v24 = vmul.f32 0.03125, %v399_v23 }
 0x2b6   :  { %v401_v25 = vadd.f32 1e-05, %v400_v24 }
 0x2b8   :  { %1267 = vrsqrt.f32 %v401_v25 }
 0x2c2   :  { %v1268_v30 = vpop.eup %1267 }
 0x2c3   :  { %v403_v31 = vmul.f32 %v1268_v30, %v395_v7 }
 0x2c5   :  { %v408_v35 = vmul.f32 %v1003_v32, %v403_v31 }
 0x2c7   :  { %v413_v41 = vadd.f32 %v1004_v37, %v408_v35 }
 0x2c9   :  { %v466_v44 = vmax.f32 %v413_v41, 0.0 }
 0x308   :  { %v443_v27 = vpop.xlane.xlu1 %442 }
 0x309   :  { %v444_v28 = vmul.f32 0.03125, %v443_v27  ;;  %v788_v27 = vpack.c.bf16 %v1033_v11, %v1033_v11 }
 0x30b   :  { %v445_v29 = vadd.f32 1e-05, %v444_v28 }
 0x30c   :  { %v463_v39 = vpop.permute.xlu1 %462 }
 0x30d   :  { %1269 = vrsqrt.f32 %v445_v29 }
 0x317   :  { %v1270_v33 = vpop.eup %1269 }
 0x318   :  { %v447_v36 = vmul.f32 %v1270_v33, %v435_v3 }
 0x31a   :  { %v456_v40 = vmul.f32 %v454_v26, %v447_v36 }
 0x31c   :  { %v465_v42 = vadd.f32 %v463_v39, %v456_v40  ;;  %v1035_v40 = vld [vmem:[%s1613_s3 + $0x9] ss:$0 sm:$0xff] }
 0x31e   :  { %v467_v43 = vmax.f32 %v465_v42, 0.0 }
 0x320   :  { %v469_v45 = vrot.slane %v467_v43, 2 }
 0x322   :  { %v472_v46 = vsel %vm471_vm3, %v466_v44, %v469_v45 }
 0x323   :  { %v473_v47 = vpack.c.bf16 %v472_v46, %v472_v46 }
 0x325   :  { %1131 = vmatmul.mubr.msk.bf16.vlgmr.msra.gmra.mrb[4].mxu0 %vm511_vm4, %v473_v47 }
 0x326   :  { %1170 = vmatprep.mubr.msk.bf16.mxu0 %vm1301_vm2, %v1298_v38  ;;  %1155 = vmatpush3.bf16.msra.mxu0 %v1251_v50 }
 0x327   :  { %1156 = vmatprep.subr.bf16.mxu0 %v1298_v38 }
 0x32a   :  { %1157 = vmatpush3.bf16.msra.mxu0 %v1252_v51 }
 0x32b   :  { %1158 = vmatprep.subr.bf16.mxu0 %v1298_v38 }
 0x32e   :  { %1159 = vmatpush3.bf16.msra.mxu0 %v1253_v52 }
 0x32f   :  { %1160 = vmatprep.subr.bf16.mxu0 %v1298_v38 }
 0x332   :  { %1161 = vmatpush3.bf16.msra.mxu0 %v1254_v53 }
 0x333   :  { %1162 = vmatprep.subr.bf16.mxu0 %v1298_v38 }
 0x336   :  { %1163 = vmatpush3.bf16.msra.mxu0 %v1255_v54 }
 0x337   :  { %1164 = vmatprep.subr.bf16.mxu0 %v1298_v38 }
 0x33a   :  { %1165 = vmatpush3.bf16.msra.mxu0 %v1256_v55 }
 0x33b   :  { %1166 = vmatprep.subr.bf16.mxu0 %v1298_v38 }
 0x33d   :  { %v792_v29 = vpop.xlane.xlu1 %791 }
 0x33e   :  { %1167 = vmatpush3.bf16.msra.mxu0 %v1257_v0  ;;  %v793_v30 = vmax.f32 %v792_v29, 1.0 }
 0x33f   :  { %1168 = vmatprep.subr.bf16.mxu0 %v1298_v38 }
 0x340   :  { %1271 = vrcp.f32 %v793_v30 }
 0x342   :  { %1169 = vmatpush3.bf16.msra.mxu0 %v1258_v1 }
 0x343   :  { %1174 = vmatprep.subr.bf16.mxu0 %v1298_v38 }
 0x34a   :  { %v1272_v31 = vpop.eup %1271 }
 0x3f8   :  { %v549_v57 = vpop.f32.mrb[4].mxu0 }
 0x3f9   :  { %v550_v58 = vadd.f32 %v1008_v56, %v549_v57  ;;  %v1132_v59 = vpop.f32.mrb[5].mxu0 }
 0x3fa   :  { %v552_v60 = vpop.f32.mrb[6].mxu0 }
 0x3fb   :  { %v555_v61 = vmax.f32 %v550_v58, 0.0  ;;  %v1133_v62 = vpop.f32.mrb[7].mxu0 }
 0x3fd   :  { %v556_v63 = vpack.c.bf16 %v555_v61, %v555_v61 }
 0x3ff   :  { %1151 = vmatmul.mubr.bf16.vlgmr.msra.gmra.mrb[4].mxu1 %v556_v63 }
 0x400   :  { %1196 = vmatprep.mubr.msk.bf16.mxu1 %vm1301_vm2, %v1298_v38  ;;  %1181 = vmatpush3.bf16.msra.mxu1 %v1259_v12 }
 0x401   :  { %1182 = vmatprep.subr.bf16.mxu1 %v1298_v38 }
 0x404   :  { %1183 = vmatpush3.bf16.msra.mxu1 %v1260_v14 }
 0x405   :  { %1184 = vmatprep.subr.bf16.mxu1 %v1298_v38 }
 0x408   :  { %1185 = vmatpush3.bf16.msra.mxu1 %v1261_v34 }
 0x409   :  { %1186 = vmatprep.subr.bf16.mxu1 %v1298_v38 }
 0x40c   :  { %1187 = vmatpush3.bf16.msra.mxu1 %v1262_v15 }
 0x40d   :  { %1188 = vmatprep.subr.bf16.mxu1 %v1298_v38 }
 0x410   :  { %1189 = vmatpush3.bf16.msra.mxu1 %v1263_v16 }
 0x411   :  { %1190 = vmatprep.subr.bf16.mxu1 %v1298_v38 }
 0x414   :  { %1191 = vmatpush3.bf16.msra.mxu1 %v1264_v17 }
 0x415   :  { %1192 = vmatprep.subr.bf16.mxu1 %v1298_v38 }
 0x418   :  { %1193 = vmatpush3.bf16.msra.mxu1 %v1265_v18 }
 0x419   :  { %1194 = vmatprep.subr.bf16.mxu1 %v1298_v38 }
 0x4d2   :  { %v660_v3 = vpop.f32.mrb[4].mxu1 }
 0x4d3   :  { %v661_v4 = vadd.f32 %v1014_v2, %v660_v3  ;;  %v1152_v5 = vpop.f32.mrb[5].mxu1 }
 0x4d4   :  { %v663_v6 = vpop.f32.mrb[6].mxu1 }
 0x4d5   :  { %v666_v7 = vmax.f32 %v661_v4, 0.0  ;;  %v1153_v8 = vpop.f32.mrb[7].mxu1 }
 0x4d7   :  { %v667_v9 = vpack.c.bf16 %v666_v7, %v666_v7 }
 0x4d9   :  { %1171 = vmatmul.mubr.bf16.vlgmr.msra.gmra.mrb[8].mxu0 %v667_v9 }
 0x4da   :  { %1176 = vmatprep.mubr.msk.bf16.mxu0 %vm1301_vm2, %v1298_v38  ;;  %v1266_v38 = vld [vmem:[%s1612_s2 + $0xf8] sm:$0xff]   ;;  %s1273_s2 = scalar_lea.vmem %s963_s8, 32 }
 0x4db   :  { %1195 = vmatpush3.bf16.msra.mxu1 %v1266_v38  ;;  %p1274_p0 = scmp.ne.s32.totalorder %s963_s8, %s1273_s2  ;;  %p1279_p2 = scmp.lt.s32.totalorder %s1273_s2, %s1273_s2 }
 0x4dd   :  { %p1280_p3 = por %p1279_p2, %p1278_p1 }
 0x4df   :  { %p1281_p4 = pnand %p1280_p3, %p1274_p0 }
 0x5ac   :  { %v771_v20 = vpop.f32.mrb[8].mxu0 }
 0x5ad   :  { %v772_v21 = vadd.f32 %v1023_v19, %v771_v20  ;;  %v1172_v22 = vpop.f32.mrb[9].mxu0 }
 0x5ae   :  { %v774_v23 = vpop.f32.mrb[10].mxu0 }
 0x5af   :  { %v777_v24 = vmax.f32 %v772_v21, 0.0  ;;  %v1173_v25 = vpop.f32.mrb[11].mxu0 }
 0x5b1   :  { %v794_v26 = vpack.c.bf16 %v777_v24, %v777_v24 }
 0x5b3   :  { %v801_v28 = vsel %vm799_vm7, %v794_v26, 0 }
 0x5b4   :  { %1175 = vmatpush3.bf16.msra.mxu0 %v801_v28 }
 0x5b7   :  { %1177 = vmatmul.mubr.msk.bf16.vlgmr.msra.gmra.mrb[12].mxu0 %vm795_vm8, %v788_v27 }
 0x68a   :  { %v837_v32 = vpop.f32.mrb[12].mxu0 }
 0x68b   :  { %v844_v33 = vmul.f32 %v1272_v31, %v837_v32  ;;  %v1178_v35 = vpop.f32.mrb[13].mxu0 }
 0x68c   :  { %v840_v36 = vpop.f32.mrb[14].mxu0 }
 0x68d   :  { %v845_v37 = vpack.c.bf16 %v844_v33, %v844_v33  ;;  %v1179_v39 = vpop.f32.mrb[15].mxu0 }
 0x68f   :  { %1197 = vmatmul.mubr.bf16.vlgmr.msra.gmra.mrb[8].mxu1 %v845_v37 }
 0x762   :  { %v949_v41 = vpop.f32.mrb[8].mxu1 }
 0x763   :  { %v950_v42 = vadd.f32 %v1035_v40, %v949_v41  ;;  %v1198_v43 = vpop.f32.mrb[9].mxu1 }
 0x764   :  { %v952_v44 = vpop.f32.mrb[10].mxu1 }
 0x765   :  { %955 = vst [vmem:[#allocation2] sm:$0x3] %v950_v42  ;;  %v1199_v45 = vpop.f32.mrb[11].mxu1 }
 0x766   :  { %1284 = shalt.err (!%p1281_p4)
}
 0x767   :  { %s1285_s3 = scalar_lea.hbm %s1615_s5, 32 }
 0x768   :  { %p1286_p5 = scmp.ne.s32.totalorder %s1615_s5, %s1285_s3  ;;  %p1289_p6 = scmp.lt.u32.totalorder %s1285_s3, %s1615_s5 }
 0x76a   :  { %p1291_p7 = pnand %p1289_p6, %p1286_p5 }
 0x76c   :  { %1294 = shalt.err (!%p1291_p7)
}
 0x76d   :  { %965 = dma.vmem_to_hbm [thread:$0]  %s963_s8, 32, %s1615_s5, [#allocation3]  }
 0x76e   :  { %1295 = dma.done.wait [#allocation3], 32  }
 0x76f   :  { %1296 = vsyncadd [#allocation3], 4294967264 }
 0x770   :  { %969 = vsyncpa [#allocation3], 1 }

</bundles_post_ra>
